<compile_context>
chip_gen: v7x
topology: tpu7x:2x2x1
jax: 0.10.0
libtpu: 0.0.40
codegen_flags: <defaults>
</compile_context>

<pallas_src>
import functools

import jax
import jax.numpy as jnp
from jax.experimental import pallas as pl
from jax.experimental.pallas import tpu as pltpu

_LANES = 128
_MAX_BLOCK_ROWS = 1024  # (1024, 128) f32 tile = 512 KiB


def _h2_scalar(b: float) -> float:
    # mirrors SPOCU.h2_function (pure python scalar)
    if b > 0:
        return (b ** 3) * (b ** 5 - 2 * b ** 4 + 2)
    return 0.0


def _spocu_kernel(x_ref, o_ref, *, alpha, beta, inv_gamma, offset):
    # Load in the input dtype, compute the polynomial in f32 (h^8 terms would
    # amplify bf16 rounding), store back in the output dtype.
    x = x_ref[...].astype(jnp.float32)
    v = x * inv_gamma + beta               # x / gamma + beta
    h = jnp.maximum(v, 0.0)                # clip(v, 0)
    h2 = h * h
    h4 = h2 * h2
    hv = (h2 * h) * (h4 * (h - 2.0) + 2.0)  # h^3 * (h^5 - 2 h^4 + 2)
    o_ref[...] = (alpha * hv - offset).astype(o_ref.dtype)


def spocu_pallas(x, alpha: float, beta: float, gamma: float):
    """Apply SPOCU elementwise to an NCHW (or any-shape) array via Pallas."""
    orig_shape = x.shape
    orig_dtype = x.dtype

    xf = x.reshape(-1)  # contiguous reshape: free (no HBM pass)
    n = xf.shape[0]

    # Pad only if numel is not a multiple of the lane width (rare).
    n_pad = ((n + _LANES - 1) // _LANES) * _LANES
    if n_pad != n:
        xf = jnp.pad(xf, (0, n_pad - n))
    rows = n_pad // _LANES
    x2d = xf.reshape(rows, _LANES)

    # Block rows: as large as possible (up to 1024), divisible by 8; the last
    # (possibly partial) row-block is masked by Pallas (grid = cdiv).
    rows_rounded = ((rows + 7) // 8) * 8
    block_rows = min(_MAX_BLOCK_ROWS, rows_rounded)
    grid = (pl.cdiv(rows, block_rows),)

    offset = float(alpha) * _h2_scalar(float(beta))

    kernel = functools.partial(
        _spocu_kernel,
        alpha=float(alpha),
        beta=float(beta),
        inv_gamma=1.0 / float(gamma),
        offset=offset,
    )

    out2d = pl.pallas_call(
        kernel,
        out_shape=jax.ShapeDtypeStruct((rows, _LANES), orig_dtype),
        grid_spec=pltpu.PrefetchScalarGridSpec(
            num_scalar_prefetch=0,
            grid=grid,
            in_specs=[pl.BlockSpec((block_rows, _LANES), lambda i: (i, 0))],
            out_specs=pl.BlockSpec((block_rows, _LANES), lambda i: (i, 0)),
        ),
        compiler_params=pltpu.CompilerParams(
            dimension_semantics=("parallel",),
        ),
    )(x2d)

    out = out2d.reshape(-1)
    if n_pad != n:
        out = out[:n]
    return out.reshape(orig_shape)


def spocu_reference(x, alpha, beta, gamma):
    v = x.astype(jnp.float32) / gamma + beta
    h = jnp.clip(v, 0.0, None)
    hv = h ** 3 * (h ** 5 - 2.0 * h ** 4 + 2.0)
    return (alpha * hv - alpha * _h2_scalar(beta)).astype(x.dtype)


if __name__ == "__main__":
    # SPOCU paper's canonical parameters
    alpha, beta, gamma = 3.0937, 0.6653, 4.437

    key = jax.random.PRNGKey(0)
    x = jax.random.normal(key, (2, 4, 16, 16), dtype=jnp.float32)  # NCHW

    out = spocu_pallas(x, alpha, beta, gamma)
    out = jax.block_until_ready(out)

    ref = spocu_reference(x, alpha, beta, gamma)
    assert out.shape == x.shape and out.dtype == x.dtype
    assert jnp.allclose(out, ref, atol=1e-5, rtol=1e-5), "mismatch vs reference"

    # Also exercise a non-multiple-of-tile shape and a bf16 input to cover the
    # ragged / in-kernel-cast paths.
    x2 = jax.random.normal(jax.random.PRNGKey(1), (3, 5, 7, 11), dtype=jnp.bfloat16)
    out2 = jax.block_until_ready(spocu_pallas(x2, alpha, beta, gamma))
    ref2 = spocu_reference(x2, alpha, beta, gamma)
    assert out2.shape == x2.shape and out2.dtype == x2.dtype
    assert jnp.allclose(out2.astype(jnp.float32), ref2.astype(jnp.float32),
                        atol=5e-2, rtol=5e-2), "bf16 mismatch vs reference"

    print("KERNEL_OK")
</pallas_src>

<mosaic_0001>
module attributes {stable_mosaic.version = 11 : i64} {
  func.func @_spocu_kernel(%arg0: i32, %arg1: memref<16x128xf32, #tpu.memory_space<vmem>>, %arg2: memref<16x128xf32, #tpu.memory_space<vmem>>) attributes {dimension_semantics = [#tpu.dimension_semantics<parallel>], iteration_bounds = array<i64: 1>, scalar_prefetch = 0 : i64, scratch_operands = 0 : i64, tpu.core_type = #tpu.core_type<tc>, window_params = [{transform_indices = @transform_0, window_bounds = array<i64: 16, 128>}, {transform_indices = @transform_1, window_bounds = array<i64: 16, 128>}]} {
    %c0 = arith.constant 0 : index
    %c0_0 = arith.constant 0 : index
    %0 = vector.load %arg1[%c0, %c0_0] : memref<16x128xf32, #tpu.memory_space<vmem>>, vector<16x128xf32>
    %cst = arith.constant 0.2253775 : f32
    %1 = vector.broadcast %cst : f32 to vector<16x128xf32>
    %2 = arith.mulf %0, %1 : vector<16x128xf32>
    %cst_1 = arith.constant 6.653000e-01 : f32
    %3 = vector.broadcast %cst_1 : f32 to vector<16x128xf32>
    %4 = arith.addf %2, %3 : vector<16x128xf32>
    %cst_2 = arith.constant 0.000000e+00 : f32
    %5 = vector.broadcast %cst_2 : f32 to vector<16x128xf32>
    %6 = arith.maximumf %4, %5 : vector<16x128xf32>
    %7 = arith.mulf %6, %6 : vector<16x128xf32>
    %8 = arith.mulf %7, %7 : vector<16x128xf32>
    %9 = arith.mulf %7, %6 : vector<16x128xf32>
    %cst_3 = arith.constant 2.000000e+00 : f32
    %10 = vector.broadcast %cst_3 : f32 to vector<16x128xf32>
    %11 = arith.subf %6, %10 : vector<16x128xf32>
    %12 = arith.mulf %8, %11 : vector<16x128xf32>
    %cst_4 = arith.constant 2.000000e+00 : f32
    %13 = vector.broadcast %cst_4 : f32 to vector<16x128xf32>
    %14 = arith.addf %12, %13 : vector<16x128xf32>
    %15 = arith.mulf %9, %14 : vector<16x128xf32>
    %cst_5 = arith.constant 3.093700e+00 : f32
    %16 = vector.broadcast %cst_5 : f32 to vector<16x128xf32>
    %17 = arith.mulf %16, %15 : vector<16x128xf32>
    %cst_6 = arith.constant 1.58382857 : f32
    %18 = vector.broadcast %cst_6 : f32 to vector<16x128xf32>
    %19 = arith.subf %17, %18 : vector<16x128xf32>
    %c0_7 = arith.constant 0 : index
    %c0_8 = arith.constant 0 : index
    %20 = vector.load %arg2[%c0_7, %c0_8] : memref<16x128xf32, #tpu.memory_space<vmem>>, vector<16x128xf32>
    tpu.vector_store %arg2[%c0_7, %c0_8], %19 {strides = array<i32>} : memref<16x128xf32, #tpu.memory_space<vmem>>, vector<16x128xf32>,
    return
  }
  func.func @transform_0(%arg0: i32) -> (i32, i32) {
    %c0_i32 = arith.constant 0 : i32
    %c0_i32_0 = arith.constant 0 : i32
    return %arg0, %c0_i32 : i32, i32
  }
  func.func @transform_1(%arg0: i32) -> (i32, i32) {
    %c0_i32 = arith.constant 0 : i32
    %c0_i32_0 = arith.constant 0 : i32
    return %arg0, %c0_i32 : i32, i32
  }
}

</mosaic_0001>

<bundles_post_ra>
// kernel: tpu_custom_call.1
= control target key start
LH: loop header
LB: loop body
LE: loop exit
PB: predicated region body
PF: predicated region fallthrough
CT: control target
= control target key end

     0   :  { %6 = vsyncpa [#allocation3], 0  ;;  %s168_s0 = inlined_call_operand.hbm [shape: f32[16,128], index: 0, kind: input, shape index: {}]   ;;  %s169_s1 = inlined_call_operand.hbm [shape: f32[16,128], index: 1, kind: output, shape index: {}]  }
   0x1   :  { %7 = vsyncpa [#allocation4], 0  ;;  %s124_s6 = smov [#allocation2]   ;;  %s76_s10 = scalar_lea.hbm %s168_s0, 256 }
   0x2   :  { %s13_s7 = sshll.u32 %s124_s6, 4  ;;  %p77_p0 = scmp.ne.s32.totalorder %s168_s0, %s76_s10  ;;  %s14_s7 = int_to_ptr.vmem [resolvable:$true] %s13_s7 }
   0x3   :  { %p80_p1 = scmp.lt.u32.totalorder %s76_s10, %s168_s0 }
   0x5   :  { %p82_p2 = pnand %p80_p1, %p77_p0 }
   0x7   :  { %85 = shalt.err (!%p82_p2)
}
   0x8   :  { %s86_s15 = scalar_lea.vmem %s14_s7, 256  ;;  %p91_p4 = scmp.lt.s32.totalorder %s14_s7, %s14_s7 }
   0x9   :  { %p87_p3 = scmp.ne.s32.totalorder %s14_s7, %s86_s15  ;;  %p92_p5 = scmp.lt.s32.totalorder %s86_s15, %s86_s15 }
   0xb   :  { %p93_p6 = por %p92_p5, %p91_p4 }
   0xd   :  { %p94_p7 = pnand %p93_p6, %p87_p3 }
   0xf   :  { %97 = shalt.err (!%p94_p7)
}
  0x10   :  { %s125_s16 = smov 128   ;;  %s126_s17 = smov 8  }
  0x11   :  { %19 = dma.hbm_to_vmem [thread:$0]  %s168_s0, 256, %s14_s7, [#allocation3], %s125_s16, %s125_s16, %s126_s17  }
  0x12   :  { %120 = dma.done.wait [#allocation3], 256  }
  0x13   :  { %121 = vsyncadd [#allocation3], 4294967040  ;;  %v23_v0 = vld [vmem:[#allocation2] sm:$0xff]  ;;  %v24_v1 = vld [vmem:[#allocation2 + $0x8] sm:$0xff]  ;;  %s127_s0 = smov [#allocation5]  }
  0x14   :  { %v25_v2 = vmul.f32 0.2253775, %v23_v0  ;;  %v26_v3 = vmul.f32 0.2253775, %v24_v1  ;;  %s56_s20 = sshll.u32 %s127_s0, 4  ;;  %s57_s20 = int_to_ptr.vmem [resolvable:$true] %s56_s20 }
  0x15   :  { %s98_s21 = scalar_lea.vmem %s57_s20, 256  ;;  %p103_p9 = scmp.lt.s32.totalorder %s57_s20, %s57_s20 }
  0x16   :  { %v27_v4 = vadd.f32 0.6653, %v25_v2  ;;  %v28_v5 = vadd.f32 0.6653, %v26_v3  ;;  %p99_p8 = scmp.ne.s32.totalorder %s57_s20, %s98_s21  ;;  %p104_p10 = scmp.lt.s32.totalorder %s98_s21, %s98_s21 }
  0x18   :  { %v29_v6 = vmax.f32 %v27_v4, 0.0  ;;  %v30_v7 = vmax.f32 %v28_v5, 0.0  ;;  %p105_p11 = por %p104_p10, %p103_p9 }
  0x1a   :  { %v31_v8 = vmul.f32 %v29_v6, %v29_v6  ;;  %v68_v9 = vadd.f32 -2.0, %v29_v6  ;;  %v32_v10 = vmul.f32 %v30_v7, %v30_v7  ;;  %v69_v11 = vadd.f32 -2.0, %v30_v7  ;;  %p106_p12 = pnand %p105_p11, %p99_p8 }
  0x1c   :  { %v33_v12 = vmul.f32 %v31_v8, %v31_v8  ;;  %v34_v13 = vmul.f32 %v32_v10, %v32_v10  ;;  %v35_v14 = vmul.f32 %v31_v8, %v29_v6  ;;  %v36_v16 = vmul.f32 %v32_v10, %v30_v7 }
  0x1e   :  { %v39_v15 = vmul.f32 %v68_v9, %v33_v12  ;;  %v40_v17 = vmul.f32 %v69_v11, %v34_v13 }
  0x20   :  { %v41_v18 = vadd.f32 2.0, %v39_v15  ;;  %v42_v19 = vadd.f32 2.0, %v40_v17 }
  0x22   :  { %v43_v20 = vmul.f32 %v41_v18, %v35_v14  ;;  %v44_v21 = vmul.f32 %v42_v19, %v36_v16 }
  0x24   :  { %v45_v22 = vmul.f32 3.0937, %v43_v20  ;;  %v46_v23 = vmul.f32 3.0937, %v44_v21 }
  0x26   :  { %v70_v24 = vadd.f32 -1.5838286, %v45_v22  ;;  %v71_v25 = vadd.f32 -1.5838286, %v46_v23 }
  0x28   :  { %49 = vst [vmem:[#allocation5] sm:$0xff] %v70_v24  ;;  %50 = vst [vmem:[#allocation5 + $0x8] sm:$0xff] %v71_v25 }
  0x29   :  { %109 = shalt.err (!%p106_p12)
}
  0x2a   :  { %s110_s24 = scalar_lea.hbm %s169_s1, 256 }
  0x2b   :  { %p111_p13 = scmp.ne.s32.totalorder %s169_s1, %s110_s24  ;;  %p114_p0 = scmp.lt.u32.totalorder %s110_s24, %s169_s1 }
  0x2d   :  { %p116_p1 = pnand %p114_p0, %p111_p13 }
  0x2f   :  { %119 = shalt.err (!%p116_p1)
}
  0x30   :  { %62 = dma.vmem_to_hbm [thread:$0]  %s57_s20, 256, %s169_s1, [#allocation4], %s125_s16, %s125_s16, %s126_s17  }
  0x31   :  { %122 = dma.done.wait [#allocation4], 256  }
  0x32   :  { %123 = vsyncadd [#allocation4], 4294967040 }
  0x33   :  { %66 = vsyncpa [#allocation3], 1 }
  0x34   :  { %67 = vsyncpa [#allocation4], 1 }

</bundles_post_ra>
